<compile_context>
chip_gen: v7x
topology: tpu7x:2x2x1
jax: 0.10.0
libtpu: 0.0.40
codegen_flags: <defaults>
</compile_context>

<pallas_src>
import inspect

import jax
import jax.numpy as jnp
from jax.experimental import pallas as pl
from jax.experimental.pallas import tpu as pltpu

NEG_SLOPE = 0.01  # torch.nn.LeakyReLU default negative_slope


def _round_up(n, m):
    return ((n + m - 1) // m) * m


def _vmem_capacity_bytes():
    """Per-core VMEM capacity; conservative v7x default if the query fails."""
    try:
        cap = int(getattr(pltpu.get_tpu_info(), "vmem_capacity_bytes", 0))
        if cap > 0:
            return cap
    except Exception:
        pass
    return 64 << 20


def _supports_pipeline_mode():
    """One-time feature check for BlockSpec(pipeline_mode=pl.Buffered(k))."""
    try:
        if not hasattr(pl, "Buffered"):
            return False
        return "pipeline_mode" in inspect.signature(pl.BlockSpec).parameters
    except Exception:
        return False


_HAS_BUFFERED = _supports_pipeline_mode()


# ----------------------------------------------------------------------------
# Kernel
# ----------------------------------------------------------------------------
def make_mlp_kernel(layer_is_skip, num_lin, relu, do_softmax, d_out_valid, d_out_pad):
    """Fused MLP kernel: all linear layers + activations (+ masked softmax)."""
    n_w = sum(2 if s else 1 for s in layer_is_skip)

    def kernel(*refs):
        x_ref = refs[0]
        w_refs = refs[1:1 + n_w]
        b_refs = refs[1 + n_w:1 + n_w + num_lin]
        out_ref = refs[-1]

        inp = x_ref[...]              # MXU operand dtype (bf16 or f32), kept for skips
        op_dtype = inp.dtype
        x_op = inp
        wi = 0
        h = None
        for l in range(num_lin):
            # cat([x, input], 1) @ W  ==  x @ W_top + input @ W_bot
            acc = jnp.dot(x_op, w_refs[wi][...], preferred_element_type=jnp.float32)
            wi += 1
            if layer_is_skip[l]:
                acc = acc + jnp.dot(inp, w_refs[wi][...],
                                    preferred_element_type=jnp.float32)
                wi += 1
            h = acc + b_refs[l][...]            # bias already f32 -> h is f32
            if l < num_lin - 1:                 # activation on all but the last layer
                # NOTE: padded-column invariant relies on act(0) == 0, which holds
                # for ReLU and LeakyReLU.  Any new activation must preserve this.
                if relu:
                    h = jnp.maximum(h, 0.0)
                else:                           # LeakyReLU
                    h = jnp.where(h >= 0, h, NEG_SLOPE * h)
                x_op = h.astype(op_dtype)       # next MXU operand (no-op for f32)

        y = h                                    # f32 [tm, d_out_pad]
        if do_softmax:
            if d_out_pad != d_out_valid:
                lane = jax.lax.broadcasted_iota(jnp.int32, y.shape, 1)
                y = jnp.where(lane < d_out_valid, y, jnp.float32(-1e30))
            m = jnp.max(y, axis=-1, keepdims=True)
            e = jnp.exp(y - m)
            s = jnp.sum(e, axis=-1, keepdims=True)
            y = e / s                            # exact divide: rows sum to 1
        # Store only the valid output columns (masked store when d_out < 128);
        # avoids HBM write amplification and the wrapper-side slice pass.
        out_ref[...] = y[:, :d_out_valid].astype(out_ref.dtype)

    return kernel


# ----------------------------------------------------------------------------
# Parameter preparation (pad to lane-dense dims, split skip weights, cast)
# ----------------------------------------------------------------------------
def _prepare_params(weights, biases, dims, skip_layer, op_dtype):
    num_lin = len(weights)
    d_in = dims[0]
    dims_pad = [d_in] + [_round_up(d, 128) for d in dims[1:]]
    layer_is_skip = tuple(l in skip_layer for l in range(num_lin))
    w_list, b_list = [], []
    for l in range(num_lin):
        w = weights[l]                           # stored [in(_cat), out]
        out_p = dims_pad[l + 1]
        out_pad_amt = out_p - dims[l + 1]
        if layer_is_skip[l]:
            d_l = dims[l]
            w_top = jnp.pad(w[:d_l, :], ((0, dims_pad[l] - d_l), (0, out_pad_amt)))
            w_bot = jnp.pad(w[d_l:, :], ((0, 0), (0, out_pad_amt)))
            w_list.append(w_top.astype(op_dtype))
            w_list.append(w_bot.astype(op_dtype))
        else:
            wp = jnp.pad(w, ((0, dims_pad[l] - dims[l]), (0, out_pad_amt)))
            w_list.append(wp.astype(op_dtype))
        b_list.append(jnp.pad(biases[l], ((0, 0), (0, out_pad_amt))).astype(jnp.float32))
    return w_list, b_list, dims_pad, layer_is_skip


# ----------------------------------------------------------------------------
# Wrapper
# ----------------------------------------------------------------------------
def skip_connection_forward(x, weights, biases, dims, skip_layer,
                            relu=False, softmax=False, tm=None,
                            use_bf16_matmul=False):
    """x: [B, T, d_in] -> [B, T, d_out]."""
    B, T, d_in = x.shape
    d_out = dims[-1]
    num_lin = len(weights)
    M = B * T

    # bf16 inputs -> bf16 MXU operands (f32 accumulate).  f32 inputs stay f32
    # unless the caller opts into bf16 matmul (2-4x MXU throughput, half the
    # resident weight VMEM, f32 accumulation / bias / elementwise kept).
    if use_bf16_matmul or x.dtype == jnp.bfloat16:
        op_dtype = jnp.bfloat16
    else:
        op_dtype = jnp.float32
    x2 = x.reshape(M, d_in).astype(op_dtype)

    w_list, b_list, dims_pad, layer_is_skip = _prepare_params(
        weights, biases, dims, skip_layer, op_dtype)
    d_out_pad = dims_pad[-1]

    # Generation-aware budgeting (per TensorCore).
    cap = _vmem_capacity_bytes()            # v5e/v6e: 128 MiB, v7x: 64 MiB
    budget = int(0.75 * cap)                # shrink threshold
    limit_cap = int(0.85 * cap)             # headroom under physical VMEM

    op_bytes = jnp.dtype(op_dtype).itemsize
    out_bytes = jnp.dtype(x.dtype).itemsize
    M8 = _round_up(M, 8)
    w_bytes = sum(int(a.size) * a.dtype.itemsize for a in w_list + b_list)

    if tm is None:
        tm = 1024 if cap >= (96 << 20) else 512   # v5e/v6e vs v7x default

    # TODO(synk): when w_bytes alone exceeds `budget` (large width/depth on v7x),
    # stream weight slabs over an output-feature grid axis (pltpu.emit_pipeline)
    # instead of only shrinking tm, which does not reduce resident weights.

    def size_tiles(w_factor):
        # Row tile: MXU-aligned (multiple of 256 >= 128/256 MXU tiles, and of 16
        # for bf16 sublane packing), shrunk in 256 steps while over budget.
        tm_eff = min(_round_up(tm, 256), M8)

        def vmem_est(t):
            act_in = 2 * t * d_in * op_bytes            # double-buffered input blocks
            act_out = 2 * t * d_out * out_bytes         # double-buffered output blocks
            inter = 4 * t * max(dims_pad) * 4           # live f32 intermediates / vregs
            return w_factor * w_bytes + act_in + act_out + inter + (4 << 20)

        while tm_eff > 256 and vmem_est(tm_eff) > budget:
            tm_eff = max(256, (tm_eff // 2 // 256) * 256)
        assert tm_eff % 8 == 0
        vmem_limit = int(min(limit_cap, max(32 << 20, 1.25 * vmem_est(tm_eff))))
        return tm_eff, vmem_limit

    kernel = make_mlp_kernel(layer_is_skip, num_lin, relu, softmax, d_out, d_out_pad)

    def run(single_buffer_consts, tm_eff, vmem_limit):
        grid = (pl.cdiv(M, tm_eff),)
        x_spec = pl.BlockSpec((tm_eff, d_in), lambda i: (i, 0))
        const_kw = {}
        if single_buffer_consts:
            # Weights/biases never change across the grid: one resident buffer.
            const_kw = dict(pipeline_mode=pl.Buffered(1))
        const_specs = [pl.BlockSpec(a.shape, lambda i: (0, 0), **const_kw)
                       for a in (w_list + b_list)]
        # Unpadded output: last block dim equals the full array dim, so it is a
        # legal BlockSpec even when d_out is not a multiple of 128.
        out_spec = pl.BlockSpec((tm_eff, d_out), lambda i: (i, 0))
        return pl.pallas_call(
            kernel,
            out_shape=jax.ShapeDtypeStruct((M, d_out), x.dtype),
            grid=grid,
            in_specs=[x_spec] + const_specs,
            out_specs=out_spec,
            compiler_params=pltpu.CompilerParams(
                dimension_semantics=("parallel",),
                vmem_limit_bytes=vmem_limit),
        )(x2, *w_list, *b_list)

    if _HAS_BUFFERED:
        try:
            out = run(True, *size_tiles(w_factor=1))
        except (pltpu.LoweringException, NotImplementedError, ValueError):
            # Only specific lowering rejections of Buffered(1) fall back, and the
            # tile/VMEM sizing is re-derived for double-buffered weights.
            out = run(False, *size_tiles(w_factor=2))
    else:
        out = run(False, *size_tiles(w_factor=2))

    return out.reshape(B, T, d_out)


# ----------------------------------------------------------------------------
# Deterministic parameter init (mirrors skip_connection.__init__)
# ----------------------------------------------------------------------------
def init_skip_connection_params(key, d_in, d_out, width, depth, skip_layer,
                                weight_norm=True):
    dims = [d_in] + [width] * depth + [d_out]
    num_layers = len(dims)
    weights, biases = [], []
    for l in range(num_layers - 1):
        in_dim = dims[l] + dims[0] if l in skip_layer else dims[l]
        out_dim = dims[l + 1]
        key, kw, kb = jax.random.split(key, 3)
        if weight_norm:
            # torch default Linear init, then weight_norm reparametrization
            bound = 1.0 / jnp.sqrt(in_dim)
            v = jax.random.uniform(kw, (out_dim, in_dim), jnp.float32, -bound, bound)
            b = jax.random.uniform(kb, (out_dim,), jnp.float32, -bound, bound)
            norm = jnp.linalg.norm(v, axis=1, keepdims=True)
            g = norm                      # weight_norm init: g = ||v|| per output row
            w = g * v / norm              # effective weight
        else:
            # xavier_uniform_ + zero bias
            bound = jnp.sqrt(6.0 / (in_dim + out_dim))
            w = jax.random.uniform(kw, (out_dim, in_dim), jnp.float32, -bound, bound)
            b = jnp.zeros((out_dim,), jnp.float32)
        weights.append(jnp.asarray(w.T))               # store as [in, out]
        biases.append(jnp.asarray(b).reshape(1, out_dim))
    return dims, weights, biases


# ----------------------------------------------------------------------------
# Pure-JAX reference (mirrors the PyTorch forward exactly) for verification
# ----------------------------------------------------------------------------
def reference_forward(x, weights, biases, dims, skip_layer,
                      relu=False, softmax=False):
    B, T, D = x.shape
    inp = x.reshape(B * T, D)
    h = inp
    num_lin = len(weights)
    for l in range(num_lin):
        if l in skip_layer:
            h = jnp.concatenate([h, inp], axis=1)
        h = h @ weights[l] + biases[l]
        if l < num_lin - 1:
            if relu:
                h = jnp.maximum(h, 0.0)
            else:
                h = jnp.where(h >= 0, h, NEG_SLOPE * h)
    out = h.reshape(B, T, -1)
    if softmax:
        out = jax.nn.softmax(out, axis=-1)
    return out


if __name__ == "__main__":
    # Small shapes consistent with the module's forward: input [B, T, d_in]
    B, T = 2, 8
    d_in, d_out, width, depth = 4, 8, 32, 3
    skip_layer = [2]

    key = jax.random.PRNGKey(0)
    kp, kx = jax.random.split(key)
    dims, weights, biases = init_skip_connection_params(
        kp, d_in, d_out, width, depth, skip_layer, weight_norm=True)

    x = jax.random.normal(kx, (B, T, d_in), jnp.float32)

    # f32, LeakyReLU, no softmax
    out = jax.block_until_ready(
        skip_connection_forward(x, weights, biases, dims, skip_layer,
                                relu=False, softmax=False))
    ref = reference_forward(x, weights, biases, dims, skip_layer,
                            relu=False, softmax=False)
    assert out.shape == (B, T, d_out)
    assert jnp.allclose(out, ref, atol=1e-5, rtol=1e-5)

    # softmax path (exact divide now -> tight tolerance)
    out_sm = jax.block_until_ready(
        skip_connection_forward(x, weights, biases, dims, skip_layer,
                                relu=False, softmax=True))
    ref_sm = reference_forward(x, weights, biases, dims, skip_layer,
                               relu=False, softmax=True)
    assert jnp.allclose(out_sm, ref_sm, atol=1e-5, rtol=1e-5)
    # rows of the softmax output sum to ~1 exactly
    assert jnp.allclose(jnp.sum(out_sm, axis=-1), 1.0, atol=1e-5)

    # ragged row count (last row block partially out of bounds) + ReLU path
    B2, T2 = 2, 150
    x_rag = jax.random.normal(jax.random.PRNGKey(1), (B2, T2, d_in), jnp.float32)
    out_rag = jax.block_until_ready(
        skip_connection_forward(x_rag, weights, biases, dims, skip_layer,
                                relu=True, softmax=False))
    ref_rag = reference_forward(x_rag, weights, biases, dims, skip_layer,
                                relu=True, softmax=False)
    assert out_rag.shape == (B2, T2, d_out)
    assert jnp.allclose(out_rag, ref_rag, atol=1e-5, rtol=1e-5)

    # bf16 operands on the MXU (f32 accumulate): bf16 input path
    out_bf = jax.block_until_ready(
        skip_connection_forward(x.astype(jnp.bfloat16), weights, biases, dims,
                                skip_layer, relu=False, softmax=False))
    assert out_bf.shape == (B, T, d_out)
    assert bool(jnp.all(jnp.isfinite(out_bf.astype(jnp.float32))))

    # opt-in bf16 matmul for f32 inputs (accuracy-gated fast path): sanity check
    out_bf2 = jax.block_until_ready(
        skip_connection_forward(x, weights, biases, dims, skip_layer,
                                relu=False, softmax=False, use_bf16_matmul=True))
    assert out_bf2.shape == (B, T, d_out)
    assert bool(jnp.all(jnp.isfinite(out_bf2)))

    print("KERNEL_OK")
</pallas_src>

<mosaic_0001>
module attributes {stable_mosaic.version = 11 : i64} {
  func.func @kernel(%arg0: i32, %arg1: memref<16x4xf32, #tpu.memory_space<vmem>>, %arg2: memref<4x128xf32, #tpu.memory_space<vmem>>, %arg3: memref<128x128xf32, #tpu.memory_space<vmem>>, %arg4: memref<128x128xf32, #tpu.memory_space<vmem>>, %arg5: memref<4x128xf32, #tpu.memory_space<vmem>>, %arg6: memref<128x128xf32, #tpu.memory_space<vmem>>, %arg7: memref<1x128xf32, #tpu.memory_space<vmem>>, %arg8: memref<1x128xf32, #tpu.memory_space<vmem>>, %arg9: memref<1x128xf32, #tpu.memory_space<vmem>>, %arg10: memref<1x128xf32, #tpu.memory_space<vmem>>, %arg11: memref<16x8xf32, #tpu.memory_space<vmem>>) attributes {dimension_semantics = [#tpu.dimension_semantics<parallel>], iteration_bounds = array<i64: 1>, scalar_prefetch = 0 : i64, scratch_operands = 0 : i64, tpu.core_type = #tpu.core_type<tc>, window_params = [{transform_indices = @transform_0, window_bounds = array<i64: 16, 4>}, {pipeline_mode = #tpu.pipeline_mode<synchronous>, transform_indices = @transform_1, window_bounds = array<i64: 4, 128>}, {pipeline_mode = #tpu.pipeline_mode<synchronous>, transform_indices = @transform_2, window_bounds = array<i64: 128, 128>}, {pipeline_mode = #tpu.pipeline_mode<synchronous>, transform_indices = @transform_3, window_bounds = array<i64: 128, 128>}, {pipeline_mode = #tpu.pipeline_mode<synchronous>, transform_indices = @transform_4, window_bounds = array<i64: 4, 128>}, {pipeline_mode = #tpu.pipeline_mode<synchronous>, transform_indices = @transform_5, window_bounds = array<i64: 128, 128>}, {pipeline_mode = #tpu.pipeline_mode<synchronous>, transform_indices = @transform_6, window_bounds = array<i64: 1, 128>}, {pipeline_mode = #tpu.pipeline_mode<synchronous>, transform_indices = @transform_7, window_bounds = array<i64: 1, 128>}, {pipeline_mode = #tpu.pipeline_mode<synchronous>, transform_indices = @transform_8, window_bounds = array<i64: 1, 128>}, {pipeline_mode = #tpu.pipeline_mode<synchronous>, transform_indices = @transform_9, window_bounds = array<i64: 1, 128>}, {transform_indices = @transform_10, window_bounds = array<i64: 16, 8>}]} {
    %c0 = arith.constant 0 : index
    %c0_0 = arith.constant 0 : index
    %0 = vector.load %arg1[%c0, %c0_0] : memref<16x4xf32, #tpu.memory_space<vmem>>, vector<16x4xf32>
    %c0_1 = arith.constant 0 : index
    %c0_2 = arith.constant 0 : index
    %1 = vector.load %arg2[%c0_1, %c0_2] : memref<4x128xf32, #tpu.memory_space<vmem>>, vector<4x128xf32>
    %cst = arith.constant dense<0.000000e+00> : vector<16x128xf32>
    %2 = tpu.matmul %0, %1, %cst {dimension_numbers = #tpu.dot_dimension_numbers<[1], [0], [0], [1], [0, 0, 1, 1], [], []>} : vector<16x4xf32>, vector<4x128xf32>, vector<16x128xf32> -> vector<16x128xf32>
    %c0_3 = arith.constant 0 : index
    %c0_4 = arith.constant 0 : index
    %3 = vector.load %arg7[%c0_3, %c0_4] : memref<1x128xf32, #tpu.memory_space<vmem>>, vector<1x128xf32>
    %4 = vector.broadcast %3 : vector<1x128xf32> to vector<16x128xf32>
    %5 = arith.addf %2, %4 : vector<16x128xf32>
    %cst_5 = arith.constant 0.000000e+00 : f32
    %6 = vector.broadcast %cst_5 : f32 to vector<16x128xf32>
    %7 = arith.cmpf oge, %5, %6 : vector<16x128xf32>
    %cst_6 = arith.constant 0.00999999977 : f32
    %8 = vector.broadcast %cst_6 : f32 to vector<16x128xf32>
    %9 = arith.mulf %8, %5 : vector<16x128xf32>
    %10 = arith.select %7, %5, %9 : vector<16x128xi1>, vector<16x128xf32>
    %c0_7 = arith.constant 0 : index
    %c0_8 = arith.constant 0 : index
    %11 = vector.load %arg3[%c0_7, %c0_8] : memref<128x128xf32, #tpu.memory_space<vmem>>, vector<128x128xf32>
    %cst_9 = arith.constant dense<0.000000e+00> : vector<16x128xf32>
    %12 = tpu.matmul %10, %11, %cst_9 {dimension_numbers = #tpu.dot_dimension_numbers<[1], [0], [0], [1], [0, 0, 1, 1], [], []>} : vector<16x128xf32>, vector<128x128xf32>, vector<16x128xf32> -> vector<16x128xf32>
    %c0_10 = arith.constant 0 : index
    %c0_11 = arith.constant 0 : index
    %13 = vector.load %arg8[%c0_10, %c0_11] : memref<1x128xf32, #tpu.memory_space<vmem>>, vector<1x128xf32>
    %14 = vector.broadcast %13 : vector<1x128xf32> to vector<16x128xf32>
    %15 = arith.addf %12, %14 : vector<16x128xf32>
    %cst_12 = arith.constant 0.000000e+00 : f32
    %16 = vector.broadcast %cst_12 : f32 to vector<16x128xf32>
    %17 = arith.cmpf oge, %15, %16 : vector<16x128xf32>
    %cst_13 = arith.constant 0.00999999977 : f32
    %18 = vector.broadcast %cst_13 : f32 to vector<16x128xf32>
    %19 = arith.mulf %18, %15 : vector<16x128xf32>
    %20 = arith.select %17, %15, %19 : vector<16x128xi1>, vector<16x128xf32>
    %c0_14 = arith.constant 0 : index
    %c0_15 = arith.constant 0 : index
    %21 = vector.load %arg4[%c0_14, %c0_15] : memref<128x128xf32, #tpu.memory_space<vmem>>, vector<128x128xf32>
    %cst_16 = arith.constant dense<0.000000e+00> : vector<16x128xf32>
    %22 = tpu.matmul %20, %21, %cst_16 {dimension_numbers = #tpu.dot_dimension_numbers<[1], [0], [0], [1], [0, 0, 1, 1], [], []>} : vector<16x128xf32>, vector<128x128xf32>, vector<16x128xf32> -> vector<16x128xf32>
    %c0_17 = arith.constant 0 : index
    %c0_18 = arith.constant 0 : index
    %23 = vector.load %arg5[%c0_17, %c0_18] : memref<4x128xf32, #tpu.memory_space<vmem>>, vector<4x128xf32>
    %cst_19 = arith.constant dense<0.000000e+00> : vector<16x128xf32>
    %24 = tpu.matmul %0, %23, %cst_19 {dimension_numbers = #tpu.dot_dimension_numbers<[1], [0], [0], [1], [0, 0, 1, 1], [], []>} : vector<16x4xf32>, vector<4x128xf32>, vector<16x128xf32> -> vector<16x128xf32>
    %25 = arith.addf %22, %24 : vector<16x128xf32>
    %c0_20 = arith.constant 0 : index
    %c0_21 = arith.constant 0 : index
    %26 = vector.load %arg9[%c0_20, %c0_21] : memref<1x128xf32, #tpu.memory_space<vmem>>, vector<1x128xf32>
    %27 = vector.broadcast %26 : vector<1x128xf32> to vector<16x128xf32>
    %28 = arith.addf %25, %27 : vector<16x128xf32>
    %cst_22 = arith.constant 0.000000e+00 : f32
    %29 = vector.broadcast %cst_22 : f32 to vector<16x128xf32>
    %30 = arith.cmpf oge, %28, %29 : vector<16x128xf32>
    %cst_23 = arith.constant 0.00999999977 : f32
    %31 = vector.broadcast %cst_23 : f32 to vector<16x128xf32>
    %32 = arith.mulf %31, %28 : vector<16x128xf32>
    %33 = arith.select %30, %28, %32 : vector<16x128xi1>, vector<16x128xf32>
    %c0_24 = arith.constant 0 : index
    %c0_25 = arith.constant 0 : index
    %34 = vector.load %arg6[%c0_24, %c0_25] : memref<128x128xf32, #tpu.memory_space<vmem>>, vector<128x128xf32>
    %cst_26 = arith.constant dense<0.000000e+00> : vector<16x128xf32>
    %35 = tpu.matmul %33, %34, %cst_26 {dimension_numbers = #tpu.dot_dimension_numbers<[1], [0], [0], [1], [0, 0, 1, 1], [], []>} : vector<16x128xf32>, vector<128x128xf32>, vector<16x128xf32> -> vector<16x128xf32>
    %c0_27 = arith.constant 0 : index
    %c0_28 = arith.constant 0 : index
    %36 = vector.load %arg10[%c0_27, %c0_28] : memref<1x128xf32, #tpu.memory_space<vmem>>, vector<1x128xf32>
    %37 = vector.broadcast %36 : vector<1x128xf32> to vector<16x128xf32>
    %38 = arith.addf %35, %37 : vector<16x128xf32>
    %39 = vector.extract_strided_slice %38 {offsets = [0, 0], sizes = [16, 8], strides = [1, 1]} : vector<16x128xf32> to vector<16x8xf32>
    %c0_29 = arith.constant 0 : index
    %c0_30 = arith.constant 0 : index
    %40 = vector.load %arg11[%c0_29, %c0_30] : memref<16x8xf32, #tpu.memory_space<vmem>>, vector<16x8xf32>
    tpu.vector_store %arg11[%c0_29, %c0_30], %39 {strides = array<i32>} : memref<16x8xf32, #tpu.memory_space<vmem>>, vector<16x8xf32>,
    return
  }
  func.func @transform_0(%arg0: i32) -> (i32, i32) {
    %c0_i32 = arith.constant 0 : i32
    %c0_i32_0 = arith.constant 0 : i32
    return %arg0, %c0_i32 : i32, i32
  }
  func.func @transform_1(%arg0: i32) -> (i32, i32) {
    %c0_i32 = arith.constant 0 : i32
    %c0_i32_0 = arith.constant 0 : i32
    %c0_i32_1 = arith.constant 0 : i32
    return %c0_i32, %c0_i32_0 : i32, i32
  }
  func.func @transform_2(%arg0: i32) -> (i32, i32) {
    %c0_i32 = arith.constant 0 : i32
    %c0_i32_0 = arith.constant 0 : i32
    %c0_i32_1 = arith.constant 0 : i32
    return %c0_i32, %c0_i32_0 : i32, i32
  }
  func.func @transform_3(%arg0: i32) -> (i32, i32) {
    %c0_i32 = arith.constant 0 : i32
    %c0_i32_0 = arith.constant 0 : i32
    %c0_i32_1 = arith.constant 0 : i32
    return %c0_i32, %c0_i32_0 : i32, i32
  }
  func.func @transform_4(%arg0: i32) -> (i32, i32) {
    %c0_i32 = arith.constant 0 : i32
    %c0_i32_0 = arith.constant 0 : i32
    %c0_i32_1 = arith.constant 0 : i32
    return %c0_i32, %c0_i32_0 : i32, i32
  }
  func.func @transform_5(%arg0: i32) -> (i32, i32) {
    %c0_i32 = arith.constant 0 : i32
    %c0_i32_0 = arith.constant 0 : i32
    %c0_i32_1 = arith.constant 0 : i32
    return %c0_i32, %c0_i32_0 : i32, i32
  }
  func.func @transform_6(%arg0: i32) -> (i32, i32) {
    %c0_i32 = arith.constant 0 : i32
    %c0_i32_0 = arith.constant 0 : i32
    %c0_i32_1 = arith.constant 0 : i32
    return %c0_i32, %c0_i32_0 : i32, i32
  }
  func.func @transform_7(%arg0: i32) -> (i32, i32) {
    %c0_i32 = arith.constant 0 : i32
    %c0_i32_0 = arith.constant 0 : i32
    %c0_i32_1 = arith.constant 0 : i32
    return %c0_i32, %c0_i32_0 : i32, i32
  }
  func.func @transform_8(%arg0: i32) -> (i32, i32) {
    %c0_i32 = arith.constant 0 : i32
    %c0_i32_0 = arith.constant 0 : i32
    %c0_i32_1 = arith.constant 0 : i32
    return %c0_i32, %c0_i32_0 : i32, i32
  }
  func.func @transform_9(%arg0: i32) -> (i32, i32) {
    %c0_i32 = arith.constant 0 : i32
    %c0_i32_0 = arith.constant 0 : i32
    %c0_i32_1 = arith.constant 0 : i32
    return %c0_i32, %c0_i32_0 : i32, i32
  }
  func.func @transform_10(%arg0: i32) -> (i32, i32) {
    %c0_i32 = arith.constant 0 : i32
    %c0_i32_0 = arith.constant 0 : i32
    return %arg0, %c0_i32 : i32, i32
  }
}

</mosaic_0001>

<bundles_post_ra>
// kernel: tpu_custom_call.1
= control target key start
LH: loop header
LB: loop body
LE: loop exit
PB: predicated region body
PF: predicated region fallthrough
CT: control target
= control target key end

     0   :  { %15 = vsyncpa [#allocation3], 0  ;;  %s1082_s0 = inlined_call_operand.vmem [shape: f32[16,4], index: 0, kind: input, shape index: {}]   ;;  %s1083_s1 = inlined_call_operand.vmem [shape: f32[4,128], index: 1, kind: input, shape index: {}]   ;;  %s1084_s2 = inlined_call_operand.hbm [shape: f32[128,128], index: 2, kind: input, shape index: {}]   ;;  %s1085_s3 = inlined_call_operand.hbm [shape: f32[128,128], index: 3, kind: input, shape index: {}]   ;;  %s1086_s4 = inlined_call_operand.vmem [shape: f32[4,128], index: 4, kind: input, shape index: {}]   ;;  %s1087_s5 = inlined_call_operand.hbm [shape: f32[128,128], index: 5, kind: input, shape index: {}]   ;;  %s1088_s6 = inlined_call_operand.vmem [shape: f32[1,128], index: 6, kind: input, shape index: {}]   ;;  %s1089_s7 = inlined_call_operand.vmem [shape: f32[1,128], index: 7, kind: input, shape index: {}]   ;;  %s1090_s8 = inlined_call_operand.vmem [shape: f32[1,128], index: 8, kind: input, shape index: {}]   ;;  %s1091_s9 = inlined_call_operand.vmem [shape: f32[1,128], index: 9, kind: input, shape index: {}]   ;;  %s1092_s10 = inlined_call_operand.vmem [shape: f32[16,8], index: 10, kind: output, shape index: {}]  }
   0x1   :  { %16 = vsyncpa [#allocation5], 0  ;;  %s932_s13 = smov [#allocation4]   ;;  %s933_s15 = smov [#allocation2]  }
   0x2   :  { %s38_s14 = sshll.u32 %s932_s13, 4  ;;  %s26_s16 = sshll.u32 %s933_s15, 4  ;;  %s39_s14 = int_to_ptr.vmem [resolvable:$true] %s38_s14  ;;  %s992_s16 = int_to_ptr.vmem [resolvable:$true] %s26_s16 }
   0x3   :  { %s862_s19 = scalar_lea.hbm %s1085_s3, 2048 }
   0x4   :  { %p863_p0 = scmp.ne.s32.totalorder %s1085_s3, %s862_s19  ;;  %p866_p1 = scmp.lt.u32.totalorder %s862_s19, %s1085_s3 }
   0x6   :  { %p868_p2 = pnand %p866_p1, %p863_p0 }
   0x8   :  { %871 = shalt.err (!%p868_p2)
}
   0x9   :  { %s872_s24 = scalar_lea.vmem %s39_s14, 2048  ;;  %p877_p4 = scmp.lt.s32.totalorder %s39_s14, %s39_s14 }
   0xa   :  { %p873_p3 = scmp.ne.s32.totalorder %s39_s14, %s872_s24  ;;  %p878_p5 = scmp.lt.s32.totalorder %s872_s24, %s872_s24 }
   0xc   :  { %p879_p6 = por %p878_p5, %p877_p4 }
   0xe   :  { %p880_p7 = pnand %p879_p6, %p873_p3 }
  0x10   :  { %883 = shalt.err (!%p880_p7)
}
  0x11   :  { %s934_s25 = smov 128   ;;  %s935_s26 = smov 8  }
  0x12   :  { %44 = dma.hbm_to_vmem [thread:$0]  %s1085_s3, 2048, %s39_s14, [#allocation5], %s934_s25, %s934_s25, %s935_s26  }
  0x13   :  { %s884_s11 = scalar_lea.hbm %s1084_s2, 2048 }
  0x14   :  { %p885_p8 = scmp.ne.s32.totalorder %s1084_s2, %s884_s11  ;;  %p888_p9 = scmp.lt.u32.totalorder %s884_s11, %s1084_s2 }
  0x16   :  { %p890_p10 = pnand %p888_p9, %p885_p8 }
  0x18   :  { %893 = shalt.err (!%p890_p10)
}
  0x19   :  { %s894_s18 = scalar_lea.vmem %s992_s16, 2048  ;;  %p899_p12 = scmp.lt.s32.totalorder %s992_s16, %s992_s16 }
  0x1a   :  { %p895_p11 = scmp.ne.s32.totalorder %s992_s16, %s894_s18  ;;  %p900_p13 = scmp.lt.s32.totalorder %s894_s18, %s894_s18 }
  0x1c   :  { %p901_p0 = por %p900_p13, %p899_p12 }
  0x1e   :  { %p902_p1 = pnand %p901_p0, %p895_p11 }
  0x20   :  { %905 = shalt.err (!%p902_p1)
}
  0x21   :  { %32 = dma.hbm_to_vmem [thread:$0]  %s1084_s2, 2048, %s992_s16, [#allocation3], %s934_s25, %s934_s25, %s935_s26  }
  0x22   :  { %s936_s19 = smov [#allocation6]   ;;  %s906_s23 = scalar_lea.hbm %s1087_s5, 2048 }
  0x23   :  { %s52_s20 = sshll.u32 %s936_s19, 4  ;;  %p907_p2 = scmp.ne.s32.totalorder %s1087_s5, %s906_s23  ;;  %s53_s20 = int_to_ptr.vmem [resolvable:$true] %s52_s20 }
  0x24   :  { %p910_p3 = scmp.lt.u32.totalorder %s906_s23, %s1087_s5 }
  0x26   :  { %p912_p4 = pnand %p910_p3, %p907_p2 }
  0x28   :  { %915 = shalt.err (!%p912_p4)
}
  0x29   :  { %s916_s30 = scalar_lea.vmem %s53_s20, 2048  ;;  %p921_p6 = scmp.lt.s32.totalorder %s53_s20, %s53_s20 }
  0x2a   :  { %p917_p5 = scmp.ne.s32.totalorder %s53_s20, %s916_s30  ;;  %p922_p7 = scmp.lt.s32.totalorder %s916_s30, %s916_s30 }
  0x2c   :  { %p923_p8 = por %p922_p7, %p921_p6 }
  0x2e   :  { %p924_p9 = pnand %p923_p8, %p917_p5 }
  0x30   :  { %927 = shalt.err (!%p924_p9)
}
  0x31   :  { %58 = dma.hbm_to_vmem [thread:$0]  %s1087_s5, 2048, %s53_s20, [#allocation5], %s934_s25, %s934_s25, %s935_s26  }
  0x32   :  { %928 = dma.done.wait [#allocation3], 2048  }
  0x33   :  { %929 = vsyncadd [#allocation3], 4294965248 }
  0x34   :  { %930 = dma.done.wait [#allocation5], 4096  }
  0x35   :  { %931 = vsyncadd [#allocation5], 4294963200  ;;  %vm93_vm0 = vcmask 1043456   ;;  %vm86_vm1 = vcmask 31744   ;;  %v78_v0 = vld [vmem:[%s1083_s1] sm:$0xf] }
  0x36   :  { %v76_v1 = vld [vmem:[%s1082_s0] sm:$0xff]  ;;  %v77_v2 = vld [vmem:[%s1082_s0 + $0x8] sm:$0xff]  ;;  %644 = vmatprep.subr.msk.mxu0 %vm93_vm0, %v78_v0  ;;  %v180_v5 = vld [vmem:[#allocation2 + $0x10] sm:$0xff]  ;;  %vm565_vm8 = vcmask 64512  }
  0x37   :  { %646 = vmatprep.mubr.msk.f32.mxu0 %vm86_vm1, %v76_v1  ;;  %v178_v3 = vld [vmem:[#allocation2] sm:$0xff]  ;;  %v179_v4 = vld [vmem:[#allocation2 + $0x8] sm:$0xff]  ;;  %645 = vmatpush3.msk.msra.mxu0 %vm93_vm0, %v78_v0  ;;  %v181_v7 = vld [vmem:[#allocation2 + $0x18] sm:$0xff] }
  0x38   :  { %v759_v6 = vpack.c.bf16 %v179_v4, %v178_v3  ;;  %647 = vmatmul.mubr.msk.f32.vlgmr.msra.gmra.mrb[0].mxu0 %vm86_vm1, %v77_v2  ;;  %v763_v8 = vpack.c.bf16 %v181_v7, %v180_v5  ;;  %v182_v9 = vld [vmem:[#allocation2 + $0x20] sm:$0xff]  ;;  %v183_v10 = vld [vmem:[#allocation2 + $0x28] sm:$0xff]  ;;  %v184_v12 = vld [vmem:[#allocation2 + $0x30] sm:$0xff] }
  0x39   :  { %686 = vmatprep.mubr.msk.f32.mxu0 %vm86_vm1, %v76_v1  ;;  %v767_v11 = vpack.c.bf16 %v183_v10, %v182_v9  ;;  %v185_v13 = vld [vmem:[#allocation2 + $0x38] sm:$0xff]  ;;  %v186_v15 = vld [vmem:[#allocation2 + $0x40] sm:$0xff]  ;;  %v187_v16 = vld [vmem:[#allocation2 + $0x48] sm:$0xff] }
  0x3a   :  { %760 = vmatprep.subr.bf16.mxu1 %v759_v6  ;;  %v771_v14 = vpack.c.bf16 %v185_v13, %v184_v12  ;;  %v775_v17 = vpack.c.bf16 %v187_v16, %v186_v15  ;;  %v188_v18 = vld [vmem:[#allocation2 + $0x50] sm:$0xff]  ;;  %v189_v19 = vld [vmem:[#allocation2 + $0x58] sm:$0xff]  ;;  %v190_v21 = vld [vmem:[#allocation2 + $0x60] sm:$0xff] }
  0x3b   :  { %762 = vmatpush3.bf16.msra.mxu1 %v759_v6  ;;  %v779_v20 = vpack.c.bf16 %v189_v19, %v188_v18  ;;  %v191_v22 = vld [vmem:[#allocation2 + $0x68] sm:$0xff]  ;;  %v192_v24 = vld [vmem:[#allocation2 + $0x70] sm:$0xff]  ;;  %v193_v25 = vld [vmem:[#allocation2 + $0x78] sm:$0xff] }
  0x3c   :  { %764 = vmatprep.subr.bf16.mxu1 %v763_v8  ;;  %v783_v23 = vpack.c.bf16 %v191_v22, %v190_v21  ;;  %v787_v26 = vpack.c.bf16 %v193_v25, %v192_v24  ;;  %v298_v27 = vld [vmem:[%s1086_s4] sm:$0xf]  ;;  %v283_v29 = vld [vmem:[#allocation4 + $0x8] sm:$0xff]  ;;  %v284_v31 = vld [vmem:[#allocation4 + $0x10] sm:$0xff] }
  0x3d   :  { %v282_v28 = vld [vmem:[#allocation4] sm:$0xff]  ;;  %684 = vmatprep.subr.msk.mxu0 %vm93_vm0, %v298_v27  ;;  %v285_v32 = vld [vmem:[#allocation4 + $0x18] sm:$0xff]  ;;  %v287_v35 = vld [vmem:[#allocation4 + $0x28] sm:$0xff] }
  0x3e   :  { %v791_v30 = vpack.c.bf16 %v283_v29, %v282_v28  ;;  %685 = vmatpush3.msk.msra.mxu0 %vm93_vm0, %v298_v27  ;;  %v795_v33 = vpack.c.bf16 %v285_v32, %v284_v31  ;;  %v286_v34 = vld [vmem:[#allocation4 + $0x20] sm:$0xff]  ;;  %v288_v37 = vld [vmem:[#allocation4 + $0x30] sm:$0xff]  ;;  %v289_v38 = vld [vmem:[#allocation4 + $0x38] sm:$0xff] }
  0x3f   :  { %766 = vmatpush3.bf16.msra.mxu1 %v763_v8  ;;  %687 = vmatmul.mubr.msk.f32.vlgmr.msra.gmra.mrb[2].mxu0 %vm86_vm1, %v77_v2  ;;  %v799_v36 = vpack.c.bf16 %v287_v35, %v286_v34  ;;  %v803_v39 = vpack.c.bf16 %v289_v38, %v288_v37  ;;  %v290_v40 = vld [vmem:[#allocation4 + $0x40] sm:$0xff]  ;;  %v291_v41 = vld [vmem:[#allocation4 + $0x48] sm:$0xff]  ;;  %v292_v43 = vld [vmem:[#allocation4 + $0x50] sm:$0xff] }
  0x40   :  { %768 = vmatprep.subr.bf16.mxu1 %v767_v11  ;;  %792 = vmatprep.subr.bf16.mxu0 %v791_v30  ;;  %v807_v42 = vpack.c.bf16 %v291_v41, %v290_v40  ;;  %v293_v44 = vld [vmem:[#allocation4 + $0x58] sm:$0xff]  ;;  %v574_v46 = vld [vmem:[%s1088_s6] ss:$0 sm:$0xff]  ;;  %v295_v56 = vld [vmem:[#allocation4 + $0x68] sm:$0xff] }
  0x41   :  { %794 = vmatpush3.bf16.msra.mxu0 %v791_v30  ;;  %v811_v45 = vpack.c.bf16 %v293_v44, %v292_v43  ;;  %v294_v55 = vld [vmem:[#allocation4 + $0x60] sm:$0xff]  ;;  %v296_v58 = vld [vmem:[#allocation4 + $0x70] sm:$0xff]  ;;  %v297_v59 = vld [vmem:[#allocation4 + $0x78] sm:$0xff] }
  0x42   :  { %796 = vmatprep.subr.bf16.mxu0 %v795_v33  ;;  %v815_v57 = vpack.c.bf16 %v295_v56, %v294_v55  ;;  %v819_v60 = vpack.c.bf16 %v297_v59, %v296_v58  ;;  %v467_v61 = vld [vmem:[#allocation6] sm:$0xff]  ;;  %v468_v62 = vld [vmem:[#allocation6 + $0x8] sm:$0xff]  ;;  %v469_v63 = vld [vmem:[#allocation6 + $0x10] sm:$0xff] }
  0x43   :  { %770 = vmatpush3.bf16.msra.mxu1 %v767_v11  ;;  %v823_v0 = vpack.c.bf16 %v468_v62, %v467_v61  ;;  %v470_v1 = vld [vmem:[#allocation6 + $0x18] sm:$0xff]  ;;  %v471_v3 = vld [vmem:[#allocation6 + $0x20] sm:$0xff]  ;;  %v472_v4 = vld [vmem:[#allocation6 + $0x28] sm:$0xff] }
  0x44   :  { %772 = vmatprep.subr.bf16.mxu1 %v771_v14  ;;  %v827_v2 = vpack.c.bf16 %v470_v1, %v469_v63  ;;  %v831_v5 = vpack.c.bf16 %v472_v4, %v471_v3  ;;  %v473_v6 = vld [vmem:[#allocation6 + $0x30] sm:$0xff]  ;;  %v474_v7 = vld [vmem:[#allocation6 + $0x38] sm:$0xff]  ;;  %v475_v9 = vld [vmem:[#allocation6 + $0x40] sm:$0xff] }
  0x45   :  { %798 = vmatpush3.bf16.msra.mxu0 %v795_v33  ;;  %v835_v8 = vpack.c.bf16 %v474_v7, %v473_v6  ;;  %v476_v10 = vld [vmem:[#allocation6 + $0x48] sm:$0xff]  ;;  %v477_v12 = vld [vmem:[#allocation6 + $0x50] sm:$0xff]  ;;  %v478_v13 = vld [vmem:[#allocation6 + $0x58] sm:$0xff] }
  0x46   :  { %800 = vmatprep.subr.bf16.mxu0 %v799_v36  ;;  %v839_v11 = vpack.c.bf16 %v476_v10, %v475_v9  ;;  %v578_v15 = vld [vmem:[%s1089_s7] ss:$0 sm:$0xff]  ;;  %v480_v25 = vld [vmem:[#allocation6 + $0x68] sm:$0xff]  ;;  %v481_v27 = vld [vmem:[#allocation6 + $0x70] sm:$0xff] }
  0x47   :  { %774 = vmatpush3.bf16.msra.mxu1 %v771_v14  ;;  %v843_v14 = vpack.c.bf16 %v478_v13, %v477_v12  ;;  %v479_v24 = vld [vmem:[#allocation6 + $0x60] sm:$0xff]  ;;  %v482_v28 = vld [vmem:[#allocation6 + $0x78] sm:$0xff] }
  0x48   :  { %776 = vmatprep.subr.bf16.mxu1 %v775_v17  ;;  %v851_v29 = vpack.c.bf16 %v482_v28, %v481_v27  ;;  %v582_v30 = vld [vmem:[%s1090_s8] ss:$0 sm:$0xff] }
  0x49   :  { %802 = vmatpush3.bf16.msra.mxu0 %v799_v36 }
  0x4a   :  { %804 = vmatprep.subr.bf16.mxu0 %v803_v39 }
  0x4b   :  { %778 = vmatpush3.bf16.msra.mxu1 %v775_v17 }
  0x4c   :  { %780 = vmatprep.subr.bf16.mxu1 %v779_v20 }
  0x4d   :  { %806 = vmatpush3.bf16.msra.mxu0 %v803_v39  ;;  %v583_v39 = vld [vmem:[%s1091_s9] ss:$0 sm:$0xff] }
  0x4e   :  { %808 = vmatprep.subr.bf16.mxu0 %v807_v42 }
  0x4f   :  { %782 = vmatpush3.bf16.msra.mxu1 %v779_v20 }
  0x50   :  { %784 = vmatprep.subr.bf16.mxu1 %v783_v23 }
  0x51   :  { %810 = vmatpush3.bf16.msra.mxu0 %v807_v42 }
  0x52   :  { %812 = vmatprep.subr.bf16.mxu0 %v811_v45 }
  0x53   :  { %786 = vmatpush3.bf16.msra.mxu1 %v783_v23 }
  0x54   :  { %788 = vmatprep.subr.bf16.mxu1 %v787_v26 }
  0x55   :  { %814 = vmatpush3.bf16.msra.mxu0 %v811_v45 }
  0x56   :  { %816 = vmatprep.subr.bf16.mxu0 %v815_v57 }
  0x57   :  { %790 = vmatpush3.bf16.msra.mxu1 %v787_v26  ;;  %v847_v26 = vpack.c.bf16 %v480_v25, %v479_v24 }
  0x58   :  { %824 = vmatprep.subr.bf16.mxu1 %v823_v0 }
  0x59   :  { %818 = vmatpush3.bf16.msra.mxu0 %v815_v57 }
  0x5a   :  { %820 = vmatprep.subr.bf16.mxu0 %v819_v60 }
  0x5d   :  { %822 = vmatpush3.bf16.msra.mxu0 %v819_v60 }
 0x10b   :  { %v648_v47 = vpop.f32.mrb[0].mxu0 }
 0x10c   :  { %v169_v48 = vadd.f32 %v648_v47, %v574_v46  ;;  %v163_v49 = vpop.f32.mrb[1].mxu0 }
 0x10d   :  { %v164_v50 = vadd.f32 %v574_v46, %v163_v49 }
 0x10e   :  { %v175_v51 = vmul.f32 0.01, %v169_v48  ;;  %vm173_vm3 = vcmp.ge.f32.partialorder %v169_v48, 0.0 }
 0x10f   :  { %vm172_vm2 = vcmp.ge.f32.partialorder %v164_v50, 0.0  ;;  %v174_v52 = vmul.f32 0.01, %v164_v50 }
 0x110   :  { %v177_v54 = vsel %vm173_vm3, %v169_v48, %v175_v51 }
 0x111   :  { %v176_v53 = vsel %vm172_vm2, %v164_v50, %v174_v52 }
 0x112   :  { %681 = vmatprep.mubr.f32.mxu1 %v176_v53 }
 0x113   :  { %682 = vmatmul.mubr.f32.vlgmr.msra.gmra.mrb[0].mxu1 %v177_v54 }
 0x114   :  { %826 = vmatpush3.bf16.msra.mxu1 %v823_v0 }
 0x115   :  { %828 = vmatprep.subr.bf16.mxu1 %v827_v2 }
 0x118   :  { %830 = vmatpush3.bf16.msra.mxu1 %v827_v2 }
 0x119   :  { %832 = vmatprep.subr.bf16.mxu1 %v831_v5 }
 0x11c   :  { %834 = vmatpush3.bf16.msra.mxu1 %v831_v5 }
 0x11d   :  { %836 = vmatprep.subr.bf16.mxu1 %v835_v8 }
 0x120   :  { %838 = vmatpush3.bf16.msra.mxu1 %v835_v8 }
 0x121   :  { %840 = vmatprep.subr.bf16.mxu1 %v839_v11 }
 0x124   :  { %842 = vmatpush3.bf16.msra.mxu1 %v839_v11 }
 0x125   :  { %844 = vmatprep.subr.bf16.mxu1 %v843_v14 }
 0x128   :  { %846 = vmatpush3.bf16.msra.mxu1 %v843_v14 }
 0x129   :  { %848 = vmatprep.subr.bf16.mxu1 %v847_v26 }
 0x12c   :  { %850 = vmatpush3.bf16.msra.mxu1 %v847_v26 }
 0x12d   :  { %852 = vmatprep.subr.bf16.mxu1 %v851_v29 }
 0x130   :  { %854 = vmatpush3.bf16.msra.mxu1 %v851_v29 }
 0x1e6   :  { %v683_v16 = vpop.f32.mrb[0].mxu1 }
 0x1e7   :  { %v273_v17 = vadd.f32 %v683_v16, %v578_v15  ;;  %v267_v18 = vpop.f32.mrb[1].mxu1 }
 0x1e8   :  { %v268_v19 = vadd.f32 %v578_v15, %v267_v18 }
 0x1e9   :  { %v279_v20 = vmul.f32 0.01, %v273_v17  ;;  %vm277_vm4 = vcmp.ge.f32.partialorder %v273_v17, 0.0 }
 0x1ea   :  { %v278_v21 = vmul.f32 0.01, %v268_v19  ;;  %vm276_vm5 = vcmp.ge.f32.partialorder %v268_v19, 0.0 }
 0x1eb   :  { %v281_v23 = vsel %vm277_vm4, %v273_v17, %v279_v20 }
 0x1ec   :  { %v280_v22 = vsel %vm276_vm5, %v268_v19, %v278_v21 }
 0x1ed   :  { %721 = vmatprep.mubr.f32.mxu0 %v280_v22 }
 0x1ee   :  { %722 = vmatmul.mubr.f32.vlgmr.msra.gmra.mrb[2].mxu0 %v281_v23 }
 0x2c1   :  { %v723_v31 = vpop.f32.mrb[2].mxu0 }
 0x2c2   :  { %v460_v32 = vadd.f32 %v723_v31, %v582_v30  ;;  %v443_v33 = vpop.f32.mrb[3].mxu0 }
 0x2c3   :  { %v459_v34 = vadd.f32 %v582_v30, %v443_v33 }
 0x2c4   :  { %v464_v35 = vmul.f32 0.01, %v460_v32  ;;  %vm462_vm6 = vcmp.ge.f32.partialorder %v460_v32, 0.0 }
 0x2c5   :  { %v463_v36 = vmul.f32 0.01, %v459_v34  ;;  %vm461_vm7 = vcmp.ge.f32.partialorder %v459_v34, 0.0 }
 0x2c6   :  { %v466_v38 = vsel %vm462_vm6, %v460_v32, %v464_v35 }
 0x2c7   :  { %v465_v37 = vsel %vm461_vm7, %v459_v34, %v463_v36 }
 0x2c8   :  { %756 = vmatprep.mubr.f32.mxu1 %v465_v37 }
 0x2c9   :  { %757 = vmatmul.mubr.f32.vlgmr.msra.gmra.mrb[2].mxu1 %v466_v38 }
 0x39c   :  { %v758_v40 = vpop.f32.mrb[2].mxu1 }
 0x39d   :  { %v562_v41 = vadd.f32 %v758_v40, %v583_v39  ;;  %v556_v42 = vpop.f32.mrb[3].mxu1 }
 0x39e   :  { %v557_v43 = vadd.f32 %v583_v39, %v556_v42 }
 0x39f   :  { %567 = vst.msk [vmem:[%s1092_s10 + $0x8] sm:$0xff] %vm565_vm8, %v562_v41 }
 0x3a0   :  { %566 = vst.msk [vmem:[%s1092_s10] sm:$0xff] %vm565_vm8, %v557_v43 }
 0x3a1   :  { %572 = vsyncpa [#allocation3], 1 }
 0x3a2   :  { %573 = vsyncpa [#allocation5], 1 }

</bundles_post_ra>
